<compile_context>
chip_gen: v5e
topology: v5e:2x2
jax: 0.10.0
libtpu: 0.0.40
codegen_flags: <defaults>
</compile_context>

<pallas_src>
import math

import jax
import jax.numpy as jnp
from jax.experimental import pallas as pl
from jax.experimental.pallas import tpu as pltpu


def _round_up(a, b):
    return ((a + b - 1) // b) * b


def _cdiv(a, b):
    return (a + b - 1) // b


def _vmem_sizes():
    """Per-generation VMEM sizing: (per-step block budget, Mosaic scoped limit)."""
    cap = 64 * 1024 * 1024  # conservative fallback = v7x per-TC VMEM
    try:
        info = pltpu.get_tpu_info()
        cap = int(getattr(info, "vmem_capacity_bytes", cap)) or cap
    except Exception:
        pass
    return int(cap * 0.65), int(cap * 0.80)


# ---------------------------------------------------------------------------
# Kernels
# ---------------------------------------------------------------------------
def _mm_bias_kernel(x_ref, w_ref, b_ref, o_ref):
    """No-K-split path: single fused dot + bias + store (no accumulator)."""
    acc = jnp.dot(x_ref[...], w_ref[...], preferred_element_type=jnp.float32)
    o_ref[...] = (acc + b_ref[...].astype(jnp.float32)).astype(o_ref.dtype)


def _mm_bias_acc_inplace_kernel(x_ref, w_ref, b_ref, o_ref):
    """Split-K, float32 output: accumulate directly in the resident output block
    (its index_map ignores k), so no f32 scratch and no finalize copy."""
    k = pl.program_id(2)

    @pl.when(k == 0)
    def _():
        o_ref[...] = jnp.broadcast_to(b_ref[...], o_ref.shape).astype(o_ref.dtype)

    o_ref[...] += jnp.dot(x_ref[...], w_ref[...], preferred_element_type=jnp.float32)


def _mm_bias_acc_scratch_kernel(x_ref, w_ref, b_ref, o_ref, acc_ref):
    """Split-K, non-f32 output: f32 VMEM accumulator, store on the last k step."""
    k = pl.program_id(2)

    @pl.when(k == 0)
    def _():
        acc_ref[...] = jnp.zeros_like(acc_ref)

    acc_ref[...] += jnp.dot(x_ref[...], w_ref[...], preferred_element_type=jnp.float32)

    @pl.when(k == pl.num_programs(2) - 1)
    def _():
        o_ref[...] = (acc_ref[...] + b_ref[...].astype(jnp.float32)).astype(o_ref.dtype)


# ---------------------------------------------------------------------------
# Wrapper
# ---------------------------------------------------------------------------
def right_svd_layer(x, weight, bias=None, *, tm=None, tn=None, tk=None,
                    dropout=None):
    """y = x @ weight (+ bias), matching RightSVDLayer.forward (dropout=None)."""
    if dropout is not None:
        # TODO(synk): F.dropout path not implemented (module default is dropout=None).
        raise NotImplementedError("dropout is not supported in the Pallas kernel")

    *lead, iw = x.shape
    iw_w, ow = weight.shape
    assert iw == iw_w, (iw, iw_w)
    M = int(math.prod(lead)) if lead else 1
    out_dtype = jnp.result_type(x.dtype, weight.dtype)

    # Degenerate shapes: handle outside the kernel.
    if M == 0 or ow == 0:
        return jnp.zeros((*lead, ow), out_dtype)
    if iw == 0:
        b = bias if bias is not None else jnp.zeros((ow,), out_dtype)
        return jnp.broadcast_to(b.astype(out_dtype), (*lead, ow))

    if bias is None:
        bias = jnp.zeros((ow,), weight.dtype)

    x2 = x.reshape(M, iw)
    b2 = bias.reshape(1, ow)

    x_isz = jnp.dtype(x.dtype).itemsize
    w_isz = jnp.dtype(weight.dtype).itemsize
    o_isz = jnp.dtype(out_dtype).itemsize
    b_isz = jnp.dtype(bias.dtype).itemsize

    sub = max(8, 32 // x_isz)      # sublane pack: 8 f32 / 16 bf16 / 32 int8
    lane = 128
    M_al = _round_up(M, sub)
    N_al = _round_up(ow, lane)

    budget, vmem_limit = _vmem_sizes()
    acc_in_out = jnp.dtype(out_dtype) == jnp.dtype(jnp.float32)

    def nosplit_bytes(tm_, tn_):
        # double-buffered x / weight / bias blocks + double-buffered output block
        return (2 * (tm_ * iw * x_isz + iw * tn_ * w_isz + tn_ * b_isz)
                + 2 * tm_ * tn_ * o_isz)

    def split_bytes(tm_, tn_, tk_):
        bts = (2 * (tm_ * tk_ * x_isz + tk_ * tn_ * w_isz + tn_ * b_isz)
               + 2 * tm_ * tn_ * o_isz)
        if not acc_in_out:
            bts += tm_ * tn_ * 4   # f32 scratch accumulator
        return bts

    force_split = tk is not None and tk < iw

    # ---------------- tile selection ----------------
    path = None
    tm_sel = tn_sel = tk_sel = None
    if not force_split:
        # Path A: tn = ow (full width) -> weight panel is truly VMEM-resident.
        tm_a = min(_round_up(tm or 512, sub), M_al)
        while nosplit_bytes(tm_a, ow) > budget and tm_a > sub:
            tm_a = max(sub, _round_up(tm_a // 2, sub))
        if nosplit_bytes(tm_a, ow) <= budget:
            path, tm_sel, tn_sel = "A", tm_a, ow
        else:
            # Path B: tn < ow.  Shrink tn before tm (halving tm multiplies
            # weight re-stream traffic).
            tm_b = min(_round_up(tm or 512, sub), M_al)
            tn_b = min(_round_up(tn or 512, lane), N_al)
            while nosplit_bytes(tm_b, tn_b) > budget:
                if tn_b > lane:
                    tn_b = max(lane, _round_up(tn_b // 2, lane))
                elif tm_b > sub:
                    tm_b = max(sub, _round_up(tm_b // 2, sub))
                else:
                    break
            if nosplit_bytes(tm_b, tn_b) <= budget:
                path, tm_sel, tn_sel = "B", tm_b, tn_b

    if path is None:
        # Path C: split K.  Shrink tk first, then tn, then tm.
        tm_sel = min(_round_up(tm or 512, sub), M_al)
        tn_sel = min(_round_up(tn or 512, lane), N_al)
        K_al = _round_up(iw, lane)
        tk_sel = min(_round_up(tk, lane), K_al) if tk is not None else K_al
        while split_bytes(tm_sel, tn_sel, tk_sel) > budget and tk_sel > lane:
            tk_sel = max(lane, _round_up(tk_sel // 2, lane))
        while split_bytes(tm_sel, tn_sel, tk_sel) > budget:
            if tn_sel > lane:
                tn_sel = max(lane, _round_up(tn_sel // 2, lane))
            elif tm_sel > sub:
                tm_sel = max(sub, _round_up(tm_sel // 2, sub))
            else:
                break
        path = "C"

    # Guarantee >=2 parallel grid tiles so both v7x TensorCores get work.
    if _cdiv(M, tm_sel) * _cdiv(ow, tn_sel) < 2 and M > sub:
        tm_sel = max(sub, _round_up(_cdiv(M, 2), sub))

    # Advisory cost estimate (ideal traffic, per-operand itemsizes).
    cost = pl.CostEstimate(
        flops=2 * M * iw * ow,
        transcendentals=0,
        bytes_accessed=(M * iw * x_isz + iw * ow * w_isz + ow * b_isz
                        + M * ow * o_isz),
    )

    # ---------------- grid / specs ----------------
    if path == "A":
        n_m = _cdiv(M, tm_sel)
        grid = (n_m,)
        in_specs = [
            pl.BlockSpec((tm_sel, iw), lambda i: (i, 0)),
            # Block index never changes -> whole weight DMA'd exactly once.
            pl.BlockSpec((iw, ow), lambda i: (0, 0)),
            pl.BlockSpec((1, ow), lambda i: (0, 0)),
        ]
        out_specs = pl.BlockSpec((tm_sel, ow), lambda i: (i, 0))
        kernel, scratch_shapes = _mm_bias_kernel, []
        dims = ("parallel",)
        x_in, w_in = x2, weight
    elif path == "B":
        n_m, n_n = _cdiv(M, tm_sel), _cdiv(ow, tn_sel)
        x_bytes, w_bytes = M * iw * x_isz, iw * ow * w_isz
        tm_, tn_ = tm_sel, tn_sel
        if x_bytes + n_m * w_bytes <= n_n * x_bytes + w_bytes:
            # x resident over the inner (N) loop; weight streamed n_m times.
            grid = (n_m, n_n)
            in_specs = [
                pl.BlockSpec((tm_, iw), lambda i, j: (i, 0)),
                pl.BlockSpec((iw, tn_), lambda i, j: (0, j)),
                pl.BlockSpec((1, tn_), lambda i, j: (0, j)),
            ]
            out_specs = pl.BlockSpec((tm_, tn_), lambda i, j: (i, j))
        else:
            # weight resident over the inner (M) loop; x streamed n_n times.
            grid = (n_n, n_m)
            in_specs = [
                pl.BlockSpec((tm_, iw), lambda j, i: (i, 0)),
                pl.BlockSpec((iw, tn_), lambda j, i: (0, j)),
                pl.BlockSpec((1, tn_), lambda j, i: (0, j)),
            ]
            out_specs = pl.BlockSpec((tm_, tn_), lambda j, i: (i, j))
        kernel, scratch_shapes = _mm_bias_kernel, []
        dims = ("parallel", "parallel")
        x_in, w_in = x2, weight
    else:  # path C: split K (only path that needs a pad, and only along K).
        tm_, tn_, tk_ = tm_sel, tn_sel, tk_sel
        K_p = _round_up(iw, tk_)
        x_in = jnp.pad(x2, ((0, 0), (0, K_p - iw))) if K_p != iw else x2
        w_in = jnp.pad(weight, ((0, K_p - iw), (0, 0))) if K_p != iw else weight
        n_m, n_n, n_k = _cdiv(M, tm_), _cdiv(ow, tn_), K_p // tk_
        grid = (n_m, n_n, n_k)
        in_specs = [
            pl.BlockSpec((tm_, tk_), lambda i, j, k: (i, k)),
            pl.BlockSpec((tk_, tn_), lambda i, j, k: (k, j)),
            pl.BlockSpec((1, tn_), lambda i, j, k: (0, j)),
        ]
        out_specs = pl.BlockSpec((tm_, tn_), lambda i, j, k: (i, j))
        if acc_in_out:
            kernel, scratch_shapes = _mm_bias_acc_inplace_kernel, []
        else:
            kernel = _mm_bias_acc_scratch_kernel
            scratch_shapes = [pltpu.VMEM((tm_, tn_), jnp.float32)]
        dims = ("parallel", "parallel", "arbitrary")

    out = pl.pallas_call(
        kernel,
        out_shape=jax.ShapeDtypeStruct((M, ow), out_dtype),
        grid=grid,
        in_specs=in_specs,
        out_specs=out_specs,
        scratch_shapes=scratch_shapes,
        compiler_params=pltpu.CompilerParams(
            dimension_semantics=dims,
            vmem_limit_bytes=vmem_limit,
        ),
        cost_estimate=cost,
    )(x_in, w_in, b2)

    return out.reshape(*lead, ow)


# ---------------------------------------------------------------------------
# Parameter init mirroring reset_parameters()
# ---------------------------------------------------------------------------
def init_params(key, iw, ow, dtype=jnp.float32):
    """kaiming_uniform_(a=sqrt(5)) on (iw, ow): PyTorch fan_in = dim 1 = ow
    -> weight ~ U(+-1/sqrt(ow)); bias bound = 1/sqrt(fan_in/2)."""
    kw, kb = jax.random.split(key)
    fan_in = ow
    w_bound = 1.0 / math.sqrt(fan_in)
    b_bound = 1.0 / math.sqrt(fan_in / 2.0)
    weight = jax.random.uniform(kw, (iw, ow), dtype, -w_bound, w_bound)
    bias = jax.random.uniform(kb, (ow,), dtype, -b_bound, b_bound)
    return weight, bias


if __name__ == "__main__":
    key = jax.random.PRNGKey(0)
    k1, k2, k3, k4, k5, k6 = jax.random.split(key, 6)

    # Case 1: small aligned shapes (batch=2, seq=8, iw=32, ow=128).
    x = jax.random.normal(k1, (2, 8, 32), jnp.float32)
    w, b = init_params(k2, 32, 128)
    y = jax.block_until_ready(right_svd_layer(x, w, b))
    y_ref = jnp.dot(x, w, precision=jax.lax.Precision.HIGHEST) + b
    assert y.shape == (2, 8, 128)
    assert jnp.allclose(y, y_ref, atol=2e-2, rtol=2e-2), float(
        jnp.max(jnp.abs(y - y_ref)))

    # Case 2: odd shapes -> partial M/N edge blocks (no wrapper padding), bias=None.
    x2 = jax.random.normal(k3, (3, 5, 20), jnp.float32)
    w2, _ = init_params(k4, 20, 100)
    y2 = jax.block_until_ready(right_svd_layer(x2, w2, None))
    y2_ref = jnp.dot(x2, w2, precision=jax.lax.Precision.HIGHEST)
    assert y2.shape == (3, 5, 100)
    assert jnp.allclose(y2, y2_ref, atol=2e-2, rtol=2e-2), float(
        jnp.max(jnp.abs(y2 - y2_ref)))

    # Case 3: forced split-K path (in-place f32 accumulation over the K grid axis).
    x3 = jax.random.normal(k5, (16, 256), jnp.float32)
    w3, b3 = init_params(k6, 256, 128)
    y3 = jax.block_until_ready(right_svd_layer(x3, w3, b3, tk=128))
    y3_ref = jnp.dot(x3, w3, precision=jax.lax.Precision.HIGHEST) + b3
    assert jnp.allclose(y3, y3_ref, atol=2e-2, rtol=2e-2), float(
        jnp.max(jnp.abs(y3 - y3_ref)))

    print("KERNEL_OK")
</pallas_src>

<mosaic_0001>
module attributes {stable_mosaic.version = 11 : i64} {
  func.func @_mm_bias_kernel(%arg0: i32, %arg1: memref<8x32xf32, #tpu.memory_space<vmem>>, %arg2: memref<32x128xf32, #tpu.memory_space<vmem>>, %arg3: memref<1x128xf32, #tpu.memory_space<vmem>>, %arg4: memref<8x128xf32, #tpu.memory_space<vmem>>) attributes {dimension_semantics = [#tpu.dimension_semantics<parallel>], iteration_bounds = array<i64: 2>, scalar_prefetch = 0 : i64, scratch_operands = 0 : i64, tpu.core_type = #tpu.core_type<tc>, window_params = [{transform_indices = @transform_0, window_bounds = array<i64: 8, 32>}, {pipeline_mode = #tpu.pipeline_mode<synchronous>, transform_indices = @transform_1, window_bounds = array<i64: 32, 128>}, {pipeline_mode = #tpu.pipeline_mode<synchronous>, transform_indices = @transform_2, window_bounds = array<i64: 1, 128>}, {transform_indices = @transform_3, window_bounds = array<i64: 8, 128>}]} {
    %c0 = arith.constant 0 : index
    %c0_0 = arith.constant 0 : index
    %0 = vector.load %arg1[%c0, %c0_0] : memref<8x32xf32, #tpu.memory_space<vmem>>, vector<8x32xf32>
    %c0_1 = arith.constant 0 : index
    %c0_2 = arith.constant 0 : index
    %1 = vector.load %arg2[%c0_1, %c0_2] : memref<32x128xf32, #tpu.memory_space<vmem>>, vector<32x128xf32>
    %cst = arith.constant dense<0.000000e+00> : vector<8x128xf32>
    %2 = tpu.matmul %0, %1, %cst {dimension_numbers = #tpu.dot_dimension_numbers<[1], [0], [0], [1], [0, 0, 1, 1], [], []>} : vector<8x32xf32>, vector<32x128xf32>, vector<8x128xf32> -> vector<8x128xf32>
    %c0_3 = arith.constant 0 : index
    %c0_4 = arith.constant 0 : index
    %3 = vector.load %arg3[%c0_3, %c0_4] : memref<1x128xf32, #tpu.memory_space<vmem>>, vector<1x128xf32>
    %4 = vector.broadcast %3 : vector<1x128xf32> to vector<8x128xf32>
    %5 = arith.addf %2, %4 : vector<8x128xf32>
    %c0_5 = arith.constant 0 : index
    %c0_6 = arith.constant 0 : index
    %6 = vector.load %arg4[%c0_5, %c0_6] : memref<8x128xf32, #tpu.memory_space<vmem>>, vector<8x128xf32>
    tpu.vector_store %arg4[%c0_5, %c0_6], %5 {strides = array<i32>} : memref<8x128xf32, #tpu.memory_space<vmem>>, vector<8x128xf32>,
    return
  }
  func.func @transform_0(%arg0: i32) -> (i32, i32) {
    %c0_i32 = arith.constant 0 : i32
    %c0_i32_0 = arith.constant 0 : i32
    return %arg0, %c0_i32 : i32, i32
  }
  func.func @transform_1(%arg0: i32) -> (i32, i32) {
    %c0_i32 = arith.constant 0 : i32
    %c0_i32_0 = arith.constant 0 : i32
    %c0_i32_1 = arith.constant 0 : i32
    return %c0_i32, %c0_i32_0 : i32, i32
  }
  func.func @transform_2(%arg0: i32) -> (i32, i32) {
    %c0_i32 = arith.constant 0 : i32
    %c0_i32_0 = arith.constant 0 : i32
    %c0_i32_1 = arith.constant 0 : i32
    return %c0_i32, %c0_i32_0 : i32, i32
  }
  func.func @transform_3(%arg0: i32) -> (i32, i32) {
    %c0_i32 = arith.constant 0 : i32
    %c0_i32_0 = arith.constant 0 : i32
    return %arg0, %c0_i32 : i32, i32
  }
}

</mosaic_0001>

<bundles_post_ra>
// kernel: tpu_custom_call.1
= control target key start
LH: loop header
LB: loop body
LE: loop exit
PB: predicated region body
PF: predicated region fallthrough
CT: control target
= control target key end

     0   :  { %8 = vsyncpa [#allocation3], 0  ;;  %s704_s0 = inlined_call_operand.hbm [shape: f32[16,32], index: 0, kind: input, shape index: {}]   ;;  %s705_s1 = inlined_call_operand.hbm [shape: f32[32,128], index: 1, kind: input, shape index: {}]   ;;  %s706_s2 = inlined_call_operand.vmem [shape: f32[1,128], index: 2, kind: input, shape index: {}]   ;;  %s707_s3 = inlined_call_operand.hbm [shape: f32[16,128], index: 3, kind: output, shape index: {}]  }
   0x1   :  { %10 = vsyncpa [#allocation3 + $0x1], 0 }
   0x2   :  { %11 = vsyncpa [#allocation6], 0 }
   0x3   :  { %12 = vsyncpa [#allocation4], 0 }
   0x4   :  { %14 = vsyncpa [#allocation4 + $0x1], 0  ;;  %s565_s12 = smov 0   ;;  %s567_s13 = smov 0  }
   0x5   :  { %s569_s14 = smov 0   ;;  %s571_s15 = smov 0  }
   0x6 LB: > { %s130_s18 = sshll.u32 %s705_s1, 4  ;;  %s589_s19 = sadd.s32 4294967295, %s540_s15   ;;  %s540_s15 = sphi %s571_s15, %s717_s15   ;;  %s536_s14 = sphi %s569_s14, %s716_s14   ;;  %s532_s13 = sphi %s567_s13, %s715_s13   ;;  %s528_s12 = sphi %s565_s12, %s714_s12   ;;  %s131_s18 = int_to_ptr.hbm [resolvable:$true] %s130_s18 }
   0x7   : > { %p336_p0 = scmp.ge.s32.totalorder %s540_s15, 1  ;;  %p41_p1 = scmp.eq.s32.totalorder %s589_s19, 0 }
   0x8   : > { %p119_p2 = scmp.lt.s32.totalorder %s540_s15, 3  ;;  %s542_s21 = smov [#allocation5]  }
   0x9   : > { %s132_s22 = sshll.u32 %s542_s21, 4  ;;  %s543_s23 = smov 128   ;;  %s133_s22 = int_to_ptr.vmem [resolvable:$true] %s132_s22 }
   0xa   : > { %p594_p3 = pnand %p336_p0, %p119_p2  ;;  %s544_s24 = smov 8  }
   0xb   : > { %s335_s25 = sadd.s32 4294967294, %s540_s15   ;;  %s605_s26 = sadd.s32 1, %s540_s15  }
   0xc   : > { %p358_p4 = pneg %p594_p3  ;;  %s27_s27 = sadd.s32 1, %s536_s14 }
   0xd   : > { %s24_s28 = ssub.s32 %s540_s15, %s605_s26  ;;  %p34_p7 = scmp.ne.s32.totalorder %s536_s14, %s532_s13 }
   0xe   : > { %p359_p6 = pnand %p358_p4, %p41_p1  ;;  %p25_p8 = scmp.eq.s32.totalorder %s24_s28, 0 }
   0xf   : > { %p35_p9 = scmp.eq.s32.totalorder %s540_s15, 0  ;;  %p40_p10 = scmp.ne.s32.totalorder %s532_s13, %s528_s12 }
  0x10   : > { %361 = dma.hbm_to_vmem [thread:$0]  (!%p359_p6), %s131_s18, 512, %s133_s22, [#allocation6], %s543_s23, %s543_s23, %s544_s24  }
  0x11   : > { %p106_p11 = scmp.eq.s32.totalorder %s589_s19, 1  ;;  %p621_p12 = por %p41_p1, %p40_p10 }
  0x12   : > { %s617_s29 = scalar_select %p25_p8, %s536_s14, %s27_s27  }
  0x13   : > { %p625_p13 = por %p106_p11, %p34_p7  ;;  %p112_p0 = scmp.eq.s32.totalorder %s335_s25, 1 }
  0x14   : > { %p36_p2 = por %p35_p9, %p34_p7  ;;  %s149_s5 = sand.u32 1, %s536_s14  }
  0x15   : > { %p630_p4 = por %p112_p0, %p40_p10  ;;  %p371_p6 = scmp.lt.s32.totalorder %s540_s15, 2 }
  0x16   : > { %s339_s7 = sshll.u32 %s149_s5, 3  ;;  %s340_s8 = sshll.u32 %s540_s15, 3 }
  0x17   : > { %s157_s11 = scalar_lea.hbm %s704_s0, %s340_s8  ;;  %s153_s17 = scalar_lea.vmem [#allocation2], %s339_s7 }
  0x18   : > { %s159_s16 = sshll.u32 %s157_s11, 4  ;;  %s161_s18 = sshll.u32 %s153_s17, 4  ;;  %s160_s16 = int_to_ptr.hbm [resolvable:$true] %s159_s16  ;;  %s162_s18 = int_to_ptr.vmem [resolvable:$true] %s161_s18 }
  0x19   : > { %p639_p8 = pnand %p371_p6, %p36_p2  ;;  %s150_s22 = scalar_lea.sflag [#allocation3], %s149_s5 }
  0x1a   : > { %s440_s23 = sshra.s32 %s160_s16, 4  ;;  %s447_s28 = scalar_lea.hbm %s704_s0, 16  ;;  %s441_s23 = int_to_ptr.hbm [resolvable:$true] %s440_s23 }
  0x1b   : > { %s442_s24 = scalar_lea.hbm %s441_s23, 8  ;;  %p444_p9 = pneg %p639_p8 }
  0x1c   : > { %p443_p7 = scmp.ne.s32.totalorder %s441_s23, %s442_s24  ;;  %p448_p0 = scmp.lt.s32.totalorder %s441_s23, %s704_s0 }
  0x1d   : > { %p449_p2 = scmp.lt.s32.totalorder %s447_s28, %s442_s24 }
  0x1e   : > { %p445_p10 = pnand %p444_p9, %p443_p7 }
  0x1f   : > { %p450_p6 = por %p449_p2, %p448_p0 }
  0x20   : > { %p446_p11 = pneg %p445_p10 }
  0x22   : > { %p451_p5 = pnand %p450_p6, %p446_p11 }
  0x24   : > { %454 = shalt.err (!%p451_p5)
}
  0x25   : > { %365 = dma.hbm_to_vmem [thread:$0]  (!%p639_p8), %s160_s16, 128, %s162_s18, %s150_s22  }
  0x26   : > { %170 = sbr.rel (%p594_p3) target bundleno = 185 (0xb9), region = 32  ;;  %s656_s5 = sand.u32 (!%p594_p3), 1, %s532_s13  }
  0x27   : > { %s342_s9 = sshll.u32 (!%p594_p3), %s656_s5, 3  ;;  %s173_s10 = scalar_lea.sflag (!%p594_p3), [#allocation3], %s656_s5 }
  0x28   : > { %s176_s11 = scalar_lea.vmem (!%p594_p3), [#allocation2], %s342_s9 }
  0x2b   : > { %515 = dma.done.wait (%p621_p12), %s173_s10, 128  }
  0x2c   : > { %517 = vsyncadd (%p621_p12), %s173_s10, 4294967168 }
  0x2d   : > { %519 = dma.done.wait (%p41_p1), [#allocation6], 512  }
  0x2e   : > { %521 = vsyncadd (%p41_p1), [#allocation6], 4294966784  ;;  %v209_v0 = vld [vmem:[#allocation5 + $0x18] sm:$0xff]  ;;  %v208_v1 = vld [vmem:[#allocation5 + $0x10] sm:$0xff]  ;;  %vm214_vm0 = vcmask 261120   ;;  %s347_s20 = sshll.u32 %s589_s19, 3 }
  0x2f   : > { %230 = vmatpush.msra.mxu0 %v209_v0  ;;  %v207_v2 = vld [vmem:[#allocation5 + $0x8] sm:$0xff]  ;;  %v206_v3 = vld [vmem:[#allocation5] sm:$0xff]  ;;  %v205_v4 = vld [vmem:[%s176_s11] sm:$0xff]  ;;  %s250_s17 = scalar_lea.hbm %s707_s3, %s347_s20  ;;  %s204_s22 = scalar_lea.vmem [#allocation7], %s342_s9 }
  0x30   : > { %v409_v5 = vld [vmem:[%s706_s2] ss:$0 sm:$0xff]  ;;  %s252_s23 = sshll.u32 %s204_s22, 4  ;;  %s254_s24 = sshll.u32 %s250_s17, 4  ;;  %s253_s23 = int_to_ptr.vmem [resolvable:$true] %s252_s23  ;;  %s255_s24 = int_to_ptr.hbm [resolvable:$true] %s254_s24 }
  0x31   : > { %231 = vmatpush.msra.mxu0 %v208_v1  ;;  %s240_s25 = scalar_lea.sflag [#allocation4], %s656_s5  ;;  %s484_s27 = sshra.s32 %s255_s24, 4  ;;  %s485_s27 = int_to_ptr.hbm [resolvable:$true] %s484_s27 }
  0x32   : > { %s486_s19 = scalar_lea.hbm %s485_s27, 8  ;;  %s490_s8 = scalar_lea.hbm %s707_s3, 16 }
  0x33   : > { %232 = vmatpush.msra.mxu0 %v207_v2  ;;  %p487_p1 = scmp.ne.s32.totalorder %s485_s27, %s486_s19  ;;  %p491_p12 = scmp.lt.s32.totalorder %s485_s27, %s707_s3 }
  0x34   : > { %p492_p8 = scmp.lt.s32.totalorder %s490_s8, %s486_s19 }
  0x35   : > { %233 = vmatpush.msra.mxu0 %v206_v3  ;;  %p488_p3 = pnand %p487_p1, %p625_p13 }
  0x36   : > { %345 = vmatmul.msk.f32.vlgmr.msra.gmra.mxu0 %vm214_vm0, %v205_v4  ;;  %p493_p7 = por %p492_p8, %p491_p12 }
  0x37   : > { %p489_p5 = pneg %p488_p3 }
  0x39   : > { %p494_p9 = pnand %p493_p7, %p489_p5 }
  0xb3   : > { %v235_v6 = vpop.f32.mrf.mxu0 }
  0xb4   : > { %v236_v7 = vadd.f32 %v409_v5, %v235_v6 }
  0xb6   : > { %238 = vst [vmem:[%s204_s22] sm:$0xff] %v236_v7 }
  0xb7   : > { %497 = shalt.err (!%p494_p9)
}
  0xb8   : > { %356 = dma.vmem_to_hbm [thread:$0]  (%p625_p13), %s253_s23, 128, %s255_s24, %s240_s25  }
  0xb9 PF: > { %s266_s5 = sand.u32 1, %s528_s12   ;;  %p713_p10 = scmp.ge.s32.totalorder %s540_s15, 2 }
  0xba   : > { %s267_s11 = scalar_lea.sflag [#allocation4], %s266_s5 }
  0xbb   : > { %p367_p11 = pnand %p713_p10, %p630_p4 }
  0xbd   : > { %p368_p0 = pneg %p367_p11 }
  0xbf   : > { %523 = dma.done.wait (%p368_p0), %s267_s11, 128  }
  0xc0   : > { %525 = vsyncadd (%p368_p0), %s267_s11, 4294967168  ;;  %p17_p2 = scmp.ge.s32.totalorder %s605_s26, 4   ;;  %s714_s12 = smov %s532_s13 }
  0xc1   : > { %s715_s13 = smov %s536_s14  ;;  %s716_s14 = smov %s617_s29 }
  0xc2   : > { %s717_s15 = smov %s605_s26  ;;  %19 = sbr.rel (!%p17_p2) target bundleno = 6 (0x6), region = 81 }
  0xc7   :  { %273 = vsyncpa [#allocation3], 1 }
  0xc8   :  { %275 = vsyncpa [#allocation3 + $0x1], 1 }
  0xc9   :  { %276 = vsyncpa [#allocation6], 1 }
  0xca   :  { %277 = vsyncpa [#allocation4], 1 }
  0xcb   :  { %279 = vsyncpa [#allocation4 + $0x1], 1 }

</bundles_post_ra>
